<compile_context>
chip_gen: v5e
topology: v5e:2x2
jax: 0.10.0
libtpu: 0.0.40
codegen_flags: <defaults>
</compile_context>

<pallas_src>
import functools
import math

import jax
import jax.numpy as jnp
from jax import lax
from jax.experimental import pallas as pl
from jax.experimental.pallas import tpu as pltpu

_VMEM_LIMIT = 32 * 1024 * 1024  # explicit scoped-VMEM budget; safe on v5e/v6e/v7x


# ------------------------- helpers -------------------------

def _pick_tile(dim, target, align):
    """Largest multiple of `align` that divides `dim` and is <= target.

    If dim <= target the full dim is used (single block along that axis).  If no exact
    divisor exists we raise instead of silently falling back to the full (possibly
    multi-MiB) dimension.
    """
    if dim <= target:
        return dim
    t = (target // align) * align
    while t >= align:
        if dim % t == 0:
            return t
        t -= align
    raise ValueError(
        f"no tile <= {target} (align {align}) divides dim {dim}; "
        "pad inputs or choose factorable shapes")


def _erf(x):
    # Abramowitz & Stegun 7.1.26; |err| < 1.5e-7 (HF BERT uses exact erf-GELU).
    a1, a2, a3, a4, a5 = 0.254829592, -0.284496736, 1.421413741, -1.453152027, 1.061405429
    p = 0.3275911
    ax = jnp.abs(x)
    t = 1.0 / (1.0 + p * ax)
    poly = ((((a5 * t + a4) * t + a3) * t + a2) * t + a1) * t
    y = 1.0 - poly * jnp.exp(-ax * ax)
    return jnp.where(x < 0.0, -y, y)


def _gelu_exact(x):
    return 0.5 * x * (1.0 + _erf(x * 0.7071067811865475))


# ------------------------- matmul (+bias, +optional GELU) -------------------------

def _mm_bias_single_k_kernel(x_ref, w_ref, b_ref, o_ref, *, activation):
    """Full-K single step: no accumulator scratch, epilogue straight into o_ref."""
    y = jnp.dot(x_ref[...], w_ref[...], preferred_element_type=jnp.float32) + b_ref[...]
    if activation == "gelu":
        y = _gelu_exact(y)
    o_ref[...] = y.astype(o_ref.dtype)


def _mm_bias_kernel(x_ref, w_ref, b_ref, o_ref, acc_ref, *, activation):
    """Tiled-K path: f32 VMEM accumulator, epilogue applied once at the last K step."""
    @pl.when(pl.program_id(2) == 0)
    def _():
        acc_ref[...] = jnp.zeros_like(acc_ref)

    acc_ref[...] += jnp.dot(x_ref[...], w_ref[...], preferred_element_type=jnp.float32)

    @pl.when(pl.program_id(2) == pl.num_programs(2) - 1)
    def _():
        y = acc_ref[...] + b_ref[...]
        if activation == "gelu":
            y = _gelu_exact(y)
        o_ref[...] = y.astype(o_ref.dtype)


def matmul_bias(x, w, b, activation="none", tm=512, tn=768, tk=3072):
    """out = act(x @ w + b); x/w bf16 on the MXU, f32 accumulation, bf16 output."""
    M, K = x.shape
    _, N = w.shape
    tm = _pick_tile(M, tm, 8)
    tn = _pick_tile(N, tn, 128)
    tk = _pick_tile(K, tk, 128)
    b2 = b.reshape(1, N).astype(jnp.float32)

    if tk == K:
        grid = (M // tm, N // tn)
        return pl.pallas_call(
            functools.partial(_mm_bias_single_k_kernel, activation=activation),
            out_shape=jax.ShapeDtypeStruct((M, N), jnp.bfloat16),
            grid_spec=pltpu.PrefetchScalarGridSpec(
                num_scalar_prefetch=0,
                grid=grid,
                in_specs=[
                    pl.BlockSpec((tm, K), lambda i, j: (i, 0)),
                    pl.BlockSpec((K, tn), lambda i, j: (0, j)),
                    pl.BlockSpec((1, tn), lambda i, j: (0, j)),
                ],
                out_specs=pl.BlockSpec((tm, tn), lambda i, j: (i, j)),
            ),
            compiler_params=pltpu.CompilerParams(
                dimension_semantics=("parallel", "parallel"),
                vmem_limit_bytes=_VMEM_LIMIT),
        )(x, w, b2)

    grid = (M // tm, N // tn, K // tk)
    return pl.pallas_call(
        functools.partial(_mm_bias_kernel, activation=activation),
        out_shape=jax.ShapeDtypeStruct((M, N), jnp.bfloat16),
        grid_spec=pltpu.PrefetchScalarGridSpec(
            num_scalar_prefetch=0,
            grid=grid,
            in_specs=[
                pl.BlockSpec((tm, tk), lambda i, j, k: (i, k)),
                pl.BlockSpec((tk, tn), lambda i, j, k: (k, j)),
                pl.BlockSpec((1, tn), lambda i, j, k: (0, j)),
            ],
            out_specs=pl.BlockSpec((tm, tn), lambda i, j, k: (i, j)),
            scratch_shapes=[pltpu.VMEM((tm, tn), jnp.float32)],
        ),
        compiler_params=pltpu.CompilerParams(
            dimension_semantics=("parallel", "parallel", "arbitrary"),
            vmem_limit_bytes=_VMEM_LIMIT),
    )(x, w, b2)


# ------------------------- matmul + bias + residual + LayerNorm -------------------------

def _mm_bias_res_ln_single_k_kernel(x_ref, w_ref, b_ref, r_ref, g_ref, beta_ref,
                                    o_ref, *, eps):
    h = (jnp.dot(x_ref[...], w_ref[...], preferred_element_type=jnp.float32)
         + b_ref[...] + r_ref[...].astype(jnp.float32))
    mu = jnp.mean(h, axis=-1, keepdims=True)
    var = jnp.mean((h - mu) * (h - mu), axis=-1, keepdims=True)
    o_ref[...] = ((h - mu) * lax.rsqrt(var + eps) * g_ref[...] + beta_ref[...]
                  ).astype(o_ref.dtype)


def _mm_bias_res_ln_kernel(x_ref, w_ref, b_ref, r_ref, g_ref, beta_ref,
                           o_ref, acc_ref, *, eps):
    @pl.when(pl.program_id(1) == 0)
    def _():
        acc_ref[...] = jnp.zeros_like(acc_ref)

    acc_ref[...] += jnp.dot(x_ref[...], w_ref[...], preferred_element_type=jnp.float32)

    @pl.when(pl.program_id(1) == pl.num_programs(1) - 1)
    def _():
        h = acc_ref[...] + b_ref[...] + r_ref[...].astype(jnp.float32)
        mu = jnp.mean(h, axis=-1, keepdims=True)
        var = jnp.mean((h - mu) * (h - mu), axis=-1, keepdims=True)
        o_ref[...] = ((h - mu) * lax.rsqrt(var + eps) * g_ref[...] + beta_ref[...]
                      ).astype(o_ref.dtype)


def matmul_bias_res_ln(x, w, b, res, gamma, beta, eps=1e-12, tm=512, tk=3072):
    """out = LayerNorm(x @ w + b + res) * gamma + beta; bf16 in/out, f32 LN math.

    N is kept untiled (full hidden row) so the LN reduction stays inside one block.
    Side inputs (bias/res/gamma/beta) are only consumed in the epilogue; at the default
    tile plan K collapses to one step so they are not held across a K loop.
    """
    M, K = x.shape
    _, N = w.shape
    tm = _pick_tile(M, tm, 8)
    tk = _pick_tile(K, tk, 128)
    b2 = b.reshape(1, N).astype(jnp.float32)
    g2 = gamma.reshape(1, N).astype(jnp.float32)
    be2 = beta.reshape(1, N).astype(jnp.float32)

    if tk == K:
        grid = (M // tm,)
        return pl.pallas_call(
            functools.partial(_mm_bias_res_ln_single_k_kernel, eps=eps),
            out_shape=jax.ShapeDtypeStruct((M, N), jnp.bfloat16),
            grid_spec=pltpu.PrefetchScalarGridSpec(
                num_scalar_prefetch=0,
                grid=grid,
                in_specs=[
                    pl.BlockSpec((tm, K), lambda i: (i, 0)),
                    pl.BlockSpec((K, N), lambda i: (0, 0)),
                    pl.BlockSpec((1, N), lambda i: (0, 0)),
                    pl.BlockSpec((tm, N), lambda i: (i, 0)),
                    pl.BlockSpec((1, N), lambda i: (0, 0)),
                    pl.BlockSpec((1, N), lambda i: (0, 0)),
                ],
                out_specs=pl.BlockSpec((tm, N), lambda i: (i, 0)),
            ),
            compiler_params=pltpu.CompilerParams(
                dimension_semantics=("parallel",),
                vmem_limit_bytes=_VMEM_LIMIT),
        )(x, w, b2, res, g2, be2)

    grid = (M // tm, K // tk)
    return pl.pallas_call(
        functools.partial(_mm_bias_res_ln_kernel, eps=eps),
        out_shape=jax.ShapeDtypeStruct((M, N), jnp.bfloat16),
        grid_spec=pltpu.PrefetchScalarGridSpec(
            num_scalar_prefetch=0,
            grid=grid,
            in_specs=[
                pl.BlockSpec((tm, tk), lambda i, k: (i, k)),
                pl.BlockSpec((tk, N), lambda i, k: (k, 0)),
                pl.BlockSpec((1, N), lambda i, k: (0, 0)),
                pl.BlockSpec((tm, N), lambda i, k: (i, 0)),
                pl.BlockSpec((1, N), lambda i, k: (0, 0)),
                pl.BlockSpec((1, N), lambda i, k: (0, 0)),
            ],
            out_specs=pl.BlockSpec((tm, N), lambda i, k: (i, 0)),
            scratch_shapes=[pltpu.VMEM((tm, N), jnp.float32)],
        ),
        compiler_params=pltpu.CompilerParams(
            dimension_semantics=("parallel", "arbitrary"),
            vmem_limit_bytes=_VMEM_LIMIT),
    )(x, w, b2, res, g2, be2)


# ------------------------- standalone LayerNorm (embeddings) -------------------------

def _layernorm_kernel(x_ref, g_ref, b_ref, o_ref, *, eps):
    x = x_ref[...]
    mu = jnp.mean(x, axis=-1, keepdims=True)
    var = jnp.mean((x - mu) * (x - mu), axis=-1, keepdims=True)
    o_ref[...] = ((x - mu) * lax.rsqrt(var + eps) * g_ref[...] + b_ref[...]
                  ).astype(o_ref.dtype)


def layernorm(x, gamma, beta, eps=1e-12, tm=512):
    M, D = x.shape
    tm = _pick_tile(M, tm, 8)
    return pl.pallas_call(
        functools.partial(_layernorm_kernel, eps=eps),
        out_shape=jax.ShapeDtypeStruct((M, D), jnp.bfloat16),
        grid=(M // tm,),
        in_specs=[
            pl.BlockSpec((tm, D), lambda i: (i, 0)),
            pl.BlockSpec((1, D), lambda i: (0, 0)),
            pl.BlockSpec((1, D), lambda i: (0, 0)),
        ],
        out_specs=pl.BlockSpec((tm, D), lambda i: (i, 0)),
        compiler_params=pltpu.CompilerParams(
            dimension_semantics=("parallel",),
            vmem_limit_bytes=_VMEM_LIMIT),
    )(x, gamma.reshape(1, D), beta.reshape(1, D))


# ------------------------- attention -------------------------

def _attention_kernel(qkv_ref, bias_ref, o_ref, ctx_ref, *, nheads, dh):
    """Per-batch self-attention; heads are static Dh-column slices of the fused bf16 QKV
    block (q pre-scaled by 1/sqrt(Dh)).  Each head's (S, Dh) result is written straight
    into the (S, H) f32 VMEM scratch (only one head live in vregs at a time; no concat),
    followed by a single lane-dense bf16 store."""
    H = nheads * dh
    bias = bias_ref[0]                                       # (1, S) additive key mask
    for h in range(nheads):                                  # static unroll (nheads small)
        q = qkv_ref[0, :, h * dh:(h + 1) * dh]               # (S, Dh) bf16
        k = qkv_ref[0, :, H + h * dh:H + (h + 1) * dh]       # (S, Dh) bf16
        v = qkv_ref[0, :, 2 * H + h * dh:2 * H + (h + 1) * dh]
        s = lax.dot_general(q, k, (((1,), (1,)), ((), ())),
                            preferred_element_type=jnp.float32) + bias     # (S, S) f32
        m = jnp.max(s, axis=-1, keepdims=True)
        p = jnp.exp(s - m)
        p = p * pl.reciprocal(jnp.sum(p, axis=-1, keepdims=True), approx=True)
        ctx_ref[:, h * dh:(h + 1) * dh] = jnp.dot(p.astype(jnp.bfloat16), v,
                                                  preferred_element_type=jnp.float32)
    o_ref[0] = ctx_ref[...].astype(o_ref.dtype)              # (S, H) lane-dense store


def attention(qkv, mask_bias, nheads, dh):
    # TODO(synk): at bert-base scale (S=512) a flash-style KV-tiled grid (online softmax,
    # two heads per MXU pass) would bound the SxS score block and feed megacore better;
    # at these sizes the full-S bf16 block fits VMEM comfortably.
    B, S, threeH = qkv.shape
    H = nheads * dh
    return pl.pallas_call(
        functools.partial(_attention_kernel, nheads=nheads, dh=dh),
        out_shape=jax.ShapeDtypeStruct((B, S, H), jnp.bfloat16),
        grid_spec=pltpu.PrefetchScalarGridSpec(
            num_scalar_prefetch=0,
            grid=(B,),
            in_specs=[
                pl.BlockSpec((1, S, threeH), lambda b: (b, 0, 0)),
                pl.BlockSpec((1, 1, S), lambda b: (b, 0, 0)),
            ],
            out_specs=pl.BlockSpec((1, S, H), lambda b: (b, 0, 0)),
            scratch_shapes=[pltpu.VMEM((S, H), jnp.float32)],
        ),
        compiler_params=pltpu.CompilerParams(
            dimension_semantics=("parallel",),
            vmem_limit_bytes=_VMEM_LIMIT),
    )(qkv, mask_bias)


# ------------------------- parameter init (synthetic, deterministic) -------------------------

def init_params(key, cfg):
    H, I, L = cfg["hidden"], cfg["intermediate"], cfg["layers"]
    Dh = H // cfg["heads"]
    scale = 1.0 / math.sqrt(Dh)

    def nrm(k, shape):
        return jax.random.normal(k, shape, dtype=jnp.float32) * 0.02

    keys = iter(jax.random.split(key, 16 + 16 * L))
    params = {
        "word_emb": nrm(next(keys), (cfg["vocab"], H)),
        "pos_emb":  nrm(next(keys), (cfg["max_pos"], H)),
        "type_emb": nrm(next(keys), (cfg["type_vocab"], H)),
        "emb_ln_g": jnp.ones((H,), jnp.float32),
        "emb_ln_b": jnp.zeros((H,), jnp.float32),
        "layers": [],
        # incrementalFT = nn.Linear(hidden, 2)
        "head_w": nrm(next(keys), (H, cfg["num_labels"])),
        "head_b": jnp.zeros((cfg["num_labels"],), jnp.float32),
    }
    for _ in range(L):
        q_w, k_w, v_w = nrm(next(keys), (H, H)), nrm(next(keys), (H, H)), nrm(next(keys), (H, H))
        q_b = k_b = v_b = jnp.zeros((H,), jnp.float32)
        layer = {
            # fused QKV projection; 1/sqrt(Dh) folded into the q columns; weights in bf16
            "qkv_w": jnp.concatenate([q_w * scale, k_w, v_w], axis=1).astype(jnp.bfloat16),
            "qkv_b": jnp.concatenate([q_b * scale, k_b, v_b], axis=0),
            "ao_w": nrm(next(keys), (H, H)).astype(jnp.bfloat16),
            "ao_b": jnp.zeros((H,), jnp.float32),
            "ln1_g": jnp.ones((H,), jnp.float32), "ln1_b": jnp.zeros((H,), jnp.float32),
            "i_w": nrm(next(keys), (H, I)).astype(jnp.bfloat16),
            "i_b": jnp.zeros((I,), jnp.float32),
            "o_w": nrm(next(keys), (I, H)).astype(jnp.bfloat16),
            "o_b": jnp.zeros((H,), jnp.float32),
            "ln2_g": jnp.ones((H,), jnp.float32), "ln2_b": jnp.zeros((H,), jnp.float32),
        }
        params["layers"].append(layer)
    return params


# ------------------------- forward pass -------------------------

def customized_model_forward(params, input_ids, attention_mask, token_type_ids, cfg):
    B, S = input_ids.shape
    H = cfg["hidden"]
    nheads = cfg["heads"]
    Dh = H // nheads

    # --- embeddings (table gathers are glue; LayerNorm in Pallas, bf16 activation out) ---
    pos_ids = jnp.arange(S, dtype=jnp.int32)[None, :]
    emb = (jnp.take(params["word_emb"], input_ids, axis=0)
           + jnp.take(params["pos_emb"], pos_ids, axis=0)
           + jnp.take(params["type_emb"], token_type_ids, axis=0))          # (B, S, H) f32
    x2 = layernorm(emb.reshape(B * S, H), params["emb_ln_g"], params["emb_ln_b"])  # bf16

    # additive attention-mask bias: 0 for real tokens, large negative for padding
    mask_bias = ((1.0 - attention_mask.astype(jnp.float32)) * -1e9).reshape(B, 1, S)

    # TODO(synk): at these toy shapes per-layer fusion into one pallas_call (x2 resident
    # in VMEM) would remove ~10 kernel launches / HBM round-trips per forward; the
    # per-op structure below is sized for bert-base shapes.
    for layer in params["layers"]:
        # fused QKV projection (one matmul), then lane-dense per-batch attention
        qkv = matmul_bias(x2, layer["qkv_w"], layer["qkv_b"])               # (B*S, 3H) bf16
        ctx = attention(qkv.reshape(B, S, 3 * H), mask_bias, nheads, Dh)    # (B, S, H) bf16
        # attention output projection fused with +bias +residual +LayerNorm
        x2 = matmul_bias_res_ln(ctx.reshape(B * S, H), layer["ao_w"], layer["ao_b"],
                                x2, layer["ln1_g"], layer["ln1_b"])
        # feed-forward: GELU fused into the first matmul, LN fused into the second
        ffn = matmul_bias(x2, layer["i_w"], layer["i_b"], activation="gelu")
        x2 = matmul_bias_res_ln(ffn, layer["o_w"], layer["o_b"],
                                x2, layer["ln2_g"], layer["ln2_b"])

    # last_hidden_state[:, 0] -> incrementalFT Linear(hidden, 2); tiny (B,2) matmul stays
    # in plain XLA (a 2-lane Pallas output would be all masked stores / pure overhead).
    cls = x2.reshape(B, S, H)[:, 0, :].astype(jnp.float32)                  # (B, H)
    logits = cls @ params["head_w"] + params["head_b"]                      # (B, 2) f32
    return logits


# ------------------------- main -------------------------

if __name__ == "__main__":
    cfg = dict(vocab=100, type_vocab=2, max_pos=32, hidden=32, heads=2,
               intermediate=64, layers=2, num_labels=2)
    B, S = 2, 8

    key = jax.random.PRNGKey(0)
    pkey, ikey = jax.random.split(key)
    params = init_params(pkey, cfg)

    input_ids = jax.random.randint(ikey, (B, S), 0, cfg["vocab"], dtype=jnp.int32)
    attention_mask = jnp.array([[1, 1, 1, 1, 1, 1, 1, 1],
                                [1, 1, 1, 1, 1, 0, 0, 0]], dtype=jnp.int32)
    token_type_ids = jnp.zeros((B, S), dtype=jnp.int32)

    out = customized_model_forward(params, input_ids, attention_mask, token_type_ids, cfg)
    out = jax.block_until_ready(out)
    assert out.shape == (B, cfg["num_labels"]) and out.dtype == jnp.float32
    print("KERNEL_OK")
</pallas_src>

<mosaic_0001>
module attributes {stable_mosaic.version = 11 : i64} {
  func.func @_layernorm_kernel(%arg0: i32, %arg1: memref<16x32xf32, #tpu.memory_space<vmem>>, %arg2: memref<1x32xf32, #tpu.memory_space<vmem>>, %arg3: memref<1x32xf32, #tpu.memory_space<vmem>>, %arg4: memref<16x32xbf16, #tpu.memory_space<vmem>>) attributes {dimension_semantics = [#tpu.dimension_semantics<parallel>], iteration_bounds = array<i64: 1>, scalar_prefetch = 0 : i64, scratch_operands = 0 : i64, tpu.core_type = #tpu.core_type<tc>, window_params = [{transform_indices = @transform_0, window_bounds = array<i64: 16, 32>}, {pipeline_mode = #tpu.pipeline_mode<synchronous>, transform_indices = @transform_1, window_bounds = array<i64: 1, 32>}, {pipeline_mode = #tpu.pipeline_mode<synchronous>, transform_indices = @transform_2, window_bounds = array<i64: 1, 32>}, {transform_indices = @transform_3, window_bounds = array<i64: 16, 32>}]} {
    %c0 = arith.constant 0 : index
    %c0_0 = arith.constant 0 : index
    %0 = vector.load %arg1[%c0, %c0_0] : memref<16x32xf32, #tpu.memory_space<vmem>>, vector<16x32xf32>
    %cst = arith.constant dense<0.000000e+00> : vector<16xf32>
    %1 = vector.multi_reduction <add>, %0, %cst [1] : vector<16x32xf32> to vector<16xf32>
    %2 = vector.shape_cast %1 : vector<16xf32> to vector<16x1xf32>
    %cst_1 = arith.constant 3.200000e+01 : f32
    %3 = vector.broadcast %cst_1 : f32 to vector<16x1xf32>
    %4 = arith.divf %2, %3 : vector<16x1xf32>
    %5 = vector.broadcast %4 : vector<16x1xf32> to vector<16x32xf32>
    %6 = arith.subf %0, %5 : vector<16x32xf32>
    %7 = vector.broadcast %4 : vector<16x1xf32> to vector<16x32xf32>
    %8 = arith.subf %0, %7 : vector<16x32xf32>
    %9 = arith.mulf %6, %8 : vector<16x32xf32>
    %cst_2 = arith.constant dense<0.000000e+00> : vector<16xf32>
    %10 = vector.multi_reduction <add>, %9, %cst_2 [1] : vector<16x32xf32> to vector<16xf32>
    %11 = vector.shape_cast %10 : vector<16xf32> to vector<16x1xf32>
    %cst_3 = arith.constant 3.200000e+01 : f32
    %12 = vector.broadcast %cst_3 : f32 to vector<16x1xf32>
    %13 = arith.divf %11, %12 : vector<16x1xf32>
    %14 = vector.broadcast %4 : vector<16x1xf32> to vector<16x32xf32>
    %15 = arith.subf %0, %14 : vector<16x32xf32>
    %cst_4 = arith.constant 9.99999996E-13 : f32
    %16 = vector.broadcast %cst_4 : f32 to vector<16x1xf32>
    %17 = arith.addf %13, %16 : vector<16x1xf32>
    %18 = math.rsqrt %17 : vector<16x1xf32>
    %19 = vector.broadcast %18 : vector<16x1xf32> to vector<16x32xf32>
    %20 = arith.mulf %15, %19 : vector<16x32xf32>
    %c0_5 = arith.constant 0 : index
    %c0_6 = arith.constant 0 : index
    %21 = vector.load %arg2[%c0_5, %c0_6] : memref<1x32xf32, #tpu.memory_space<vmem>>, vector<1x32xf32>
    %22 = vector.broadcast %21 : vector<1x32xf32> to vector<16x32xf32>
    %23 = arith.mulf %20, %22 : vector<16x32xf32>
    %c0_7 = arith.constant 0 : index
    %c0_8 = arith.constant 0 : index
    %24 = vector.load %arg3[%c0_7, %c0_8] : memref<1x32xf32, #tpu.memory_space<vmem>>, vector<1x32xf32>
    %25 = vector.broadcast %24 : vector<1x32xf32> to vector<16x32xf32>
    %26 = arith.addf %23, %25 : vector<16x32xf32>
    %27 = arith.truncf %26 : vector<16x32xf32> to vector<16x32xbf16>
    %c0_9 = arith.constant 0 : index
    %c0_10 = arith.constant 0 : index
    %28 = vector.load %arg4[%c0_9, %c0_10] : memref<16x32xbf16, #tpu.memory_space<vmem>>, vector<16x32xbf16>
    tpu.vector_store %arg4[%c0_9, %c0_10], %27 {strides = array<i32>} : memref<16x32xbf16, #tpu.memory_space<vmem>>, vector<16x32xbf16>,
    return
  }
  func.func @transform_0(%arg0: i32) -> (i32, i32) {
    %c0_i32 = arith.constant 0 : i32
    %c0_i32_0 = arith.constant 0 : i32
    return %arg0, %c0_i32 : i32, i32
  }
  func.func @transform_1(%arg0: i32) -> (i32, i32) {
    %c0_i32 = arith.constant 0 : i32
    %c0_i32_0 = arith.constant 0 : i32
    %c0_i32_1 = arith.constant 0 : i32
    return %c0_i32, %c0_i32_0 : i32, i32
  }
  func.func @transform_2(%arg0: i32) -> (i32, i32) {
    %c0_i32 = arith.constant 0 : i32
    %c0_i32_0 = arith.constant 0 : i32
    %c0_i32_1 = arith.constant 0 : i32
    return %c0_i32, %c0_i32_0 : i32, i32
  }
  func.func @transform_3(%arg0: i32) -> (i32, i32) {
    %c0_i32 = arith.constant 0 : i32
    %c0_i32_0 = arith.constant 0 : i32
    return %arg0, %c0_i32 : i32, i32
  }
}

</mosaic_0001>

<bundles_post_ra>
// kernel: tpu_custom_call.1
= control target key start
LH: loop header
LB: loop body
LE: loop exit
PB: predicated region body
PF: predicated region fallthrough
CT: control target
= control target key end

     0   :  { %8 = vsyncpa [#allocation3], 0  ;;  %s274_s0 = inlined_call_operand.hbm [shape: f32[16,32], index: 0, kind: input, shape index: {}]   ;;  %s275_s1 = inlined_call_operand.hbm [shape: f32[1,32], index: 1, kind: input, shape index: {}]   ;;  %s276_s2 = inlined_call_operand.vmem [shape: f32[1,32], index: 2, kind: input, shape index: {}]   ;;  %s277_s3 = inlined_call_operand.hbm [shape: bf16[16,32], index: 3, kind: output, shape index: {}]  }
   0x1   :  { %9 = vsyncpa [#allocation6], 0 }
   0x2   :  { %10 = vsyncpa [#allocation4], 0  ;;  %s15_s14 = sshll.u32 %s274_s0, 4  ;;  %s230_s15 = smov [#allocation2]   ;;  %s16_s14 = int_to_ptr.hbm [resolvable:$true] %s15_s14 }
   0x3   :  { %s17_s16 = sshll.u32 %s230_s15, 4  ;;  %s29_s19 = sshll.u32 %s275_s1, 4  ;;  %s18_s16 = int_to_ptr.vmem [resolvable:$true] %s17_s16  ;;  %s30_s19 = int_to_ptr.hbm [resolvable:$true] %s29_s19 }
   0x4   :  { %s231_s20 = smov 128   ;;  %s232_s21 = smov 8  }
   0x5   :  { %23 = dma.hbm_to_vmem [thread:$0]  %s16_s14, 256, %s18_s16, [#allocation3], %s231_s20, %s231_s20, %s232_s21  }
   0x6   :  { %s233_s22 = smov [#allocation5]  }
   0x7   :  { %s31_s23 = sshll.u32 %s233_s22, 4  ;;  %s32_s23 = int_to_ptr.vmem [resolvable:$true] %s31_s23 }
   0x8   :  { %34 = dma.hbm_to_vmem [thread:$0]  %s30_s19, 16, %s32_s23, [#allocation6]  }
   0x9   :  { %224 = dma.done.wait [#allocation3], 256  }
   0xa   :  { %225 = vsyncadd [#allocation3], 4294967040 }
   0xb   :  { %226 = dma.done.wait [#allocation6], 16  }
   0xc   :  { %227 = vsyncadd [#allocation6], 4294967280  ;;  %vm47_vm0 = vcmask 261120   ;;  %v45_v0 = vld [vmem:[#allocation2] sm:$0xff]  ;;  %v46_v2 = vld [vmem:[#allocation2 + $0x8] sm:$0xff]  ;;  %v234_v4 = vmov 32.0  }
   0xd   :  { %v48_v1 = vsel %vm47_vm0, %v45_v0, 0.0  ;;  %v51_v3 = vsel %vm47_vm0, %v46_v2, 0.0  ;;  %146 = vrcp.f32 %v234_v4  ;;  %v144_v35 = vld [vmem:[#allocation5] ss:$0 sm:$0xff]  ;;  %v145_v38 = vld [vmem:[%s276_s2] ss:$0 sm:$0xff] }
   0xe   :  { %49 = vadd.xlane.f32.xlu0 %v48_v1  ;;  %vm113_vm7 = vcmask 257024   ;;  %s235_s24 = smov [#allocation7]   ;;  %s122_s2 = sshll.u32 %s277_s3, 4  ;;  %s123_s2 = int_to_ptr.hbm [resolvable:$true] %s122_s2 }
   0xf   :  { %s120_s25 = sshll.u32 %s235_s24, 4  ;;  %s236_s28 = smov 64   ;;  %s121_s25 = int_to_ptr.vmem [resolvable:$true] %s120_s25 }
  0x10   :  { %s237_s29 = smov 4  }
  0x13   :  { %v147_v5 = vpop.eup %146 }
  0x14   :  { %v55_v6 = vmul.f32 32.0, %v147_v5  ;;  %vm59_vm1 = vweird.f32 %v147_v5 }
  0x16   :  { %52 = vadd.xlane.f32.xlu0 %v51_v3  ;;  %v56_v7 = vsub.f32 1.0, %v55_v6 }
  0x18   :  { %v57_v8 = vmul.f32 %v147_v5, %v56_v7 }
  0x1a   :  { %v58_v9 = vadd.f32 %v147_v5, %v57_v8 }
  0x1c   :  { %v60_v10 = vsel %vm59_vm1, %v147_v5, %v58_v9 }
  0x81   :  { %v50_v11 = vpop.xlane.xlu0 %49 }
  0x82   :  { %v61_v12 = vmul.f32 %v60_v10, %v50_v11 }
  0x84   :  { %v63_v13 = vsub.f32 %v45_v0, %v61_v12 }
  0x86   :  { %v65_v14 = vmul.f32 %v63_v13, %v63_v13 }
  0x88   :  { %v67_v15 = vsel %vm47_vm0, %v65_v14, 0.0 }
  0x89   :  { %68 = vadd.xlane.f32.xlu1 %v67_v15  ;;  %v53_v16 = vpop.xlane.xlu0 %52 }
  0x8a   :  { %v62_v17 = vmul.f32 %v60_v10, %v53_v16 }
  0x8c   :  { %v64_v18 = vsub.f32 %v46_v2, %v62_v17 }
  0x8e   :  { %v66_v19 = vmul.f32 %v64_v18, %v64_v18 }
  0x90   :  { %v70_v20 = vsel %vm47_vm0, %v66_v19, 0.0 }
  0x91   :  { %71 = vadd.xlane.f32.xlu1 %v70_v20 }
  0xfc   :  { %v69_v21 = vpop.xlane.xlu1 %68 }
  0xfd   :  { %v73_v22 = vmul.f32 %v69_v21, %v60_v10 }
  0xff   :  { %v75_v23 = vadd.f32 1e-12, %v73_v22 }
 0x101   :  { %148 = vrsqrt.f32 %v75_v23  ;;  %vm83_vm3 = vweird.f32 %v75_v23 }
 0x104   :  { %v72_v24 = vpop.xlane.xlu1 %71 }
 0x105   :  { %v74_v25 = vmul.f32 %v72_v24, %v60_v10 }
 0x107   :  { %v149_v26 = vpop.eup %148  ;;  %v76_v27 = vadd.f32 1e-12, %v74_v25 }
 0x108   :  { %v78_v28 = vmul.f32 %v149_v26, %v75_v23  ;;  %vm84_vm2 = vweird.f32 %v149_v26 }
 0x109   :  { %150 = vrsqrt.f32 %v76_v27  ;;  %vm85_vm4 = vmor %vm83_vm3, %vm84_vm2  ;;  %vm93_vm6 = vweird.f32 %v76_v27 }
 0x10a   :  { %v79_v29 = vmul.f32 %v149_v26, %v78_v28 }
 0x10c   :  { %v80_v30 = vmul.f32 0.5, %v79_v29 }
 0x10e   :  { %v81_v31 = vsub.f32 1.5, %v80_v30 }
 0x10f   :  { %v151_v32 = vpop.eup %150 }
 0x110   :  { %v82_v33 = vmul.f32 %v149_v26, %v81_v31  ;;  %v88_v34 = vmul.f32 %v151_v32, %v76_v27  ;;  %vm94_vm5 = vweird.f32 %v151_v32 }
 0x111   :  { %vm95_vm8 = vmor %vm93_vm6, %vm94_vm5 }
 0x112   :  { %v86_v36 = vsel %vm85_vm4, %v149_v26, %v82_v33  ;;  %v89_v37 = vmul.f32 %v151_v32, %v88_v34 }
 0x113   :  { %v97_v39 = vmul.f32 %v86_v36, %v63_v13 }
 0x114   :  { %v90_v40 = vmul.f32 0.5, %v89_v37 }
 0x115   :  { %v103_v41 = vmul.f32 %v144_v35, %v97_v39 }
 0x116   :  { %v91_v42 = vsub.f32 1.5, %v90_v40 }
 0x117   :  { %v109_v43 = vadd.f32 %v145_v38, %v103_v41 }
 0x118   :  { %v92_v44 = vmul.f32 %v151_v32, %v91_v42 }
 0x119   :  { %v111_v45 = vpack.c.bf16 %v109_v43, %v109_v43 }
 0x11a   :  { %v96_v46 = vsel %vm95_vm8, %v151_v32, %v92_v44 }
 0x11b   :  { %v98_v47 = vmul.f32 %v96_v46, %v64_v18  ;;  %114 = vst.msk [vmem:[#allocation7] sm:$0xf] %vm113_vm7, %v111_v45 }
 0x11d   :  { %v104_v48 = vmul.f32 %v144_v35, %v98_v47 }
 0x11f   :  { %v110_v49 = vadd.f32 %v145_v38, %v104_v48 }
 0x121   :  { %v112_v50 = vpack.c.bf16 %v110_v49, %v110_v49 }
 0x123   :  { %115 = vst.msk [vmem:[#allocation7 + $0x4] sm:$0xf] %vm113_vm7, %v112_v50 }
 0x124   :  { %128 = dma.vmem_to_hbm [thread:$0]  %s121_s25, 128, %s123_s2, [#allocation4], %s236_s28, %s236_s28, %s237_s29  }
 0x125   :  { %228 = dma.done.wait [#allocation4], 128  }
 0x126   :  { %229 = vsyncadd [#allocation4], 4294967168 }
 0x127   :  { %133 = vsyncpa [#allocation3], 1 }
 0x128   :  { %134 = vsyncpa [#allocation6], 1 }
 0x129   :  { %135 = vsyncpa [#allocation4], 1 }

</bundles_post_ra>
